<compile_context>
chip_gen: v7x
topology: tpu7x:2x2x1
jax: 0.10.0
libtpu: 0.0.40
codegen_flags: <defaults>
</compile_context>

<pallas_src>
import functools

import jax
import jax.numpy as jnp
from jax.experimental import pallas as pl
from jax.experimental.pallas import tpu as pltpu

QUANTILES = (0.01, 0.05, 0.1, 0.25, 0.5, 0.75, 0.9, 0.95, 0.99)


def _quantile_loss_kernel(q_ref, preds_ref, target_ref, o_ref, *,
                          batch, tile_b, ragged):
    # q_ref     : (Q, 2)  f32 VMEM, resident (constant index_map): [:,0]=q, [:,1]=q-1
    # preds_ref : (Q, TB) VMEM   -- batch on the 128-lane axis (lane-dense)
    # target_ref: (1, TB) VMEM   -- broadcasts over the quantile (sublane) axis
    # o_ref     : (8, 128) f32 VMEM -- this tile's partial sum at [0, 0], zeros elsewhere
    preds = preds_ref[...].astype(jnp.float32)        # (Q, TB), f32 math
    target = target_ref[...].astype(jnp.float32)      # (1, TB)

    q = q_ref[:, 0:1]                                 # (Q, 1)
    qm1 = q_ref[:, 1:2]                               # (Q, 1)

    errors = target - preds                           # (Q, TB)
    # pinball loss: max((q - 1) * e, q * e)
    losses = jnp.maximum(qm1 * errors, q * errors)

    def _store_partial(total):
        # Pack the scalar partial into element [0, 0] of an aligned (8, 128)
        # block (unmasked vst; trivially small vs. the tile's HBM traffic).
        r = jax.lax.broadcasted_iota(jnp.int32, o_ref.shape, 0)
        c = jax.lax.broadcasted_iota(jnp.int32, o_ref.shape, 1)
        o_ref[...] = jnp.where((r == 0) & (c == 0), total, 0.0)

    if not ragged:
        _store_partial(jnp.sum(losses))
    else:
        i = pl.program_id(0)
        last = pl.num_programs(0) - 1

        @pl.when(i != last)
        def _steady():
            # Steady state: no mask work at all.
            _store_partial(jnp.sum(losses))

        @pl.when(i == last)
        def _ragged_tail():
            # Out-of-range batch columns hold unspecified data; zero them
            # (select kills any NaN/garbage) before reducing.
            col = i * tile_b + jax.lax.broadcasted_iota(
                jnp.int32, losses.shape, 1)
            _store_partial(jnp.sum(jnp.where(col < batch, losses, 0.0)))


def quantile_loss(preds, target, quantiles=QUANTILES, *,
                  tile_b=65536, preds_layout="bq"):
    """Pinball loss matching PyTorch QuantileLoss.forward.

    preds_layout="bq":  preds is (B, Q) like the PyTorch module (a relayout to
                        lane-dense (Q, B) is done in XLA — see TODO above).
    preds_layout="qb":  preds is already (Q, B); consumed with zero relayout
                        (preferred; have the producing matmul write this shape).
    target: (B,).  Inputs may be f32 or bf16; math is f32 inside the kernel.
    Returns a scalar f32: mean over batch of sum over quantiles of
    max((q-1)*e, q*e) with e = target - preds[:, q].
    """
    quantiles = tuple(float(v) for v in quantiles)
    q_dim = len(quantiles)

    if preds_layout == "qb":
        assert preds.shape[0] == q_dim, preds.shape
        preds_t = preds                       # (Q, B), zero-relayout fast path
        batch = preds.shape[1]
    elif preds_layout == "bq":
        assert preds.shape[1] == q_dim, preds.shape
        batch = preds.shape[0]
        preds_t = preds.T                     # XLA relayout (compat path only)
    else:
        raise ValueError(f"unknown preds_layout: {preds_layout!r}")
    assert target.shape == (batch,), target.shape

    target_2d = target.reshape(1, batch)      # lane-dense, cheap reshape

    if batch <= tile_b:
        tb = batch                            # single block == full dims (always legal)
    else:
        assert tile_b % 128 == 0, "tile_b must be a multiple of 128 when B > tile_b"
        tb = tile_b
    num_tiles = pl.cdiv(batch, tb)
    ragged = (batch % tb) != 0

    # Quantile table [q, q-1] as a tiny resident VMEM input (DMA'd once).
    q_arr = jnp.asarray(quantiles, dtype=jnp.float32)
    q_tbl = jnp.stack([q_arr, q_arr - 1.0], axis=1)          # (Q, 2)

    kernel = functools.partial(_quantile_loss_kernel,
                               batch=batch, tile_b=tb, ragged=ragged)

    p_isz = preds_t.dtype.itemsize
    t_isz = target.dtype.itemsize

    # VMEM budget: double-buffered inputs (sublane-padded) + a few f32
    # elementwise temporaries the size of one losses tile.  Capped at 64 MiB
    # so the same setting is safe on v7x (64 MiB physical VMEM per TC).
    q_pad = ((q_dim + 15) // 16) * 16
    vmem_bytes = (2 * (q_pad * tb * p_isz + 16 * tb * t_isz)
                  + 3 * q_pad * tb * 4
                  + (1 << 20))
    vmem_limit = int(min(64 * 2**20, vmem_bytes + 16 * 2**20))

    cost = pl.CostEstimate(
        flops=6 * batch * q_dim,
        transcendentals=0,
        bytes_accessed=batch * q_dim * p_isz + batch * t_isz
        + num_tiles * 8 * 128 * 4 + q_dim * 2 * 4)

    partials = pl.pallas_call(
        kernel,
        out_shape=jax.ShapeDtypeStruct((num_tiles * 8, 128), jnp.float32),
        grid=(num_tiles,),
        in_specs=[
            pl.BlockSpec((q_dim, 2), lambda i: (0, 0)),   # resident quantile table
            pl.BlockSpec((q_dim, tb), lambda i: (0, i)),  # preds tiles (lane-dense)
            pl.BlockSpec((1, tb), lambda i: (0, i)),      # target tiles
        ],
        # Each tile writes its own aligned (8,128) block -> safe under "parallel".
        out_specs=pl.BlockSpec((8, 128), lambda i: (i, 0)),
        compiler_params=pltpu.CompilerParams(
            dimension_semantics=("parallel",),            # v7x: both TCs drive HBM
            vmem_limit_bytes=vmem_limit),
        cost_estimate=cost,
    )(q_tbl, preds_t, target_2d)

    # Tiny epilogue in XLA: only [0,0] of each per-tile block is nonzero.
    # torch: mean over batch of (sum over quantiles) == sum(all) / B
    return jnp.sum(partials) / jnp.float32(batch)


def _quantile_loss_ref(preds, target, quantiles=QUANTILES):
    # Pure-JAX reference mirroring the PyTorch loop.
    preds = preds.astype(jnp.float32)
    target = target.astype(jnp.float32)
    q = jnp.asarray(quantiles, jnp.float32)[None, :]
    e = target[:, None] - preds
    return jnp.mean(jnp.sum(jnp.maximum((q - 1.0) * e, q * e), axis=1))


if __name__ == "__main__":
    key = jax.random.PRNGKey(0)
    kp, kt = jax.random.split(key)
    q_dim = len(QUANTILES)

    # 1) Small case (single block path), matching the module's (B, Q) convention.
    B = 8
    preds = jax.random.normal(kp, (B, q_dim), dtype=jnp.float32)
    target = jax.random.normal(kt, (B,), dtype=jnp.float32)
    loss = quantile_loss(preds, target)
    jax.block_until_ready(loss)
    ref = _quantile_loss_ref(preds, target)
    assert jnp.allclose(loss, ref, atol=1e-5, rtol=1e-5), (loss, ref)

    # 2) Tiled path with ragged last tile (grid>1, "parallel" axis, mask gate).
    B2 = 300
    preds2 = jax.random.normal(kp, (B2, q_dim), dtype=jnp.float32)
    target2 = jax.random.normal(kt, (B2,), dtype=jnp.float32)
    loss2 = quantile_loss(preds2, target2, tile_b=128)
    jax.block_until_ready(loss2)
    ref2 = _quantile_loss_ref(preds2, target2)
    assert jnp.allclose(loss2, ref2, atol=1e-5, rtol=1e-5), (loss2, ref2)

    # 3) Zero-relayout (Q, B) producer layout path gives the same answer.
    loss2_qb = quantile_loss(preds2.T, target2, tile_b=128, preds_layout="qb")
    jax.block_until_ready(loss2_qb)
    assert jnp.allclose(loss2_qb, ref2, atol=1e-5, rtol=1e-5), (loss2_qb, ref2)

    # 4) bf16 inputs (kernel upcasts to f32 internally).
    preds_bf = preds2.astype(jnp.bfloat16)
    target_bf = target2.astype(jnp.bfloat16)
    loss_bf = quantile_loss(preds_bf, target_bf, tile_b=128)
    jax.block_until_ready(loss_bf)
    ref_bf = _quantile_loss_ref(preds_bf, target_bf)
    assert jnp.allclose(loss_bf, ref_bf, atol=1e-4, rtol=1e-4), (loss_bf, ref_bf)

    print("KERNEL_OK")
</pallas_src>

<mosaic_0001>
module attributes {stable_mosaic.version = 11 : i64} {
  func.func @_quantile_loss_kernel(%arg0: i32, %arg1: memref<9x2xf32, #tpu.memory_space<vmem>>, %arg2: memref<9x8xf32, #tpu.memory_space<vmem>>, %arg3: memref<1x8xf32, #tpu.memory_space<vmem>>, %arg4: memref<8x128xf32, #tpu.memory_space<vmem>>) attributes {dimension_semantics = [#tpu.dimension_semantics<parallel>], iteration_bounds = array<i64: 1>, scalar_prefetch = 0 : i64, scratch_operands = 0 : i64, tpu.core_type = #tpu.core_type<tc>, window_params = [{pipeline_mode = #tpu.pipeline_mode<synchronous>, transform_indices = @transform_0, window_bounds = array<i64: 9, 2>}, {transform_indices = @transform_1, window_bounds = array<i64: 9, 8>}, {transform_indices = @transform_2, window_bounds = array<i64: 1, 8>}, {transform_indices = @transform_3, window_bounds = array<i64: 8, 128>}]} {
    %c0 = arith.constant 0 : index
    %c0_0 = arith.constant 0 : index
    %0 = vector.load %arg2[%c0, %c0_0] : memref<9x8xf32, #tpu.memory_space<vmem>>, vector<9x8xf32>
    %c0_1 = arith.constant 0 : index
    %c0_2 = arith.constant 0 : index
    %1 = vector.load %arg3[%c0_1, %c0_2] : memref<1x8xf32, #tpu.memory_space<vmem>>, vector<1x8xf32>
    %c0_3 = arith.constant 0 : index
    %c0_4 = arith.constant 0 : index
    %2 = vector.load %arg1[%c0_3, %c0_4] : memref<9x2xf32, #tpu.memory_space<vmem>>, vector<9x1xf32>
    %c0_5 = arith.constant 0 : index
    %c1 = arith.constant 1 : index
    %3 = vector.load %arg1[%c0_5, %c1] : memref<9x2xf32, #tpu.memory_space<vmem>>, vector<9x1xf32>
    %4 = vector.broadcast %1 : vector<1x8xf32> to vector<9x8xf32>
    %5 = arith.subf %4, %0 : vector<9x8xf32>
    %6 = vector.broadcast %3 : vector<9x1xf32> to vector<9x8xf32>
    %7 = arith.mulf %6, %5 : vector<9x8xf32>
    %8 = vector.broadcast %2 : vector<9x1xf32> to vector<9x8xf32>
    %9 = arith.mulf %8, %5 : vector<9x8xf32>
    %10 = arith.maximumf %7, %9 : vector<9x8xf32>
    %11 = vector.shape_cast %10 : vector<9x8xf32> to vector<1x9x8xf32>
    %cst = arith.constant dense<0.000000e+00> : vector<1xf32>
    %12 = vector.multi_reduction <add>, %11, %cst [1, 2] : vector<1x9x8xf32> to vector<1xf32>
    %13 = vector.shape_cast %12 : vector<1xf32> to vector<1x1x1xf32>
    %14 = vector.extract %13[0, 0, 0] : f32 from vector<1x1x1xf32>
    %15 = tpu.iota {dimensions = array<i32: 0>} : vector<8x128xi32>
    %16 = tpu.iota {dimensions = array<i32: 1>} : vector<8x128xi32>
    %c0_i32 = arith.constant 0 : i32
    %17 = vector.broadcast %c0_i32 : i32 to vector<8x128xi32>
    %18 = arith.cmpi eq, %15, %17 : vector<8x128xi32>
    %c0_i32_6 = arith.constant 0 : i32
    %19 = vector.broadcast %c0_i32_6 : i32 to vector<8x128xi32>
    %20 = arith.cmpi eq, %16, %19 : vector<8x128xi32>
    %21 = arith.andi %18, %20 : vector<8x128xi1>
    %cst_7 = arith.constant 0.000000e+00 : f32
    %22 = vector.broadcast %14 : f32 to vector<8x128xf32>
    %23 = vector.broadcast %cst_7 : f32 to vector<8x128xf32>
    %24 = arith.select %21, %22, %23 : vector<8x128xi1>, vector<8x128xf32>
    %c0_8 = arith.constant 0 : index
    %c0_9 = arith.constant 0 : index
    %25 = vector.load %arg4[%c0_8, %c0_9] : memref<8x128xf32, #tpu.memory_space<vmem>>, vector<8x128xf32>
    tpu.vector_store %arg4[%c0_8, %c0_9], %24 {strides = array<i32>} : memref<8x128xf32, #tpu.memory_space<vmem>>, vector<8x128xf32>,
    return
  }
  func.func @transform_0(%arg0: i32) -> (i32, i32) {
    %c0_i32 = arith.constant 0 : i32
    %c0_i32_0 = arith.constant 0 : i32
    %c0_i32_1 = arith.constant 0 : i32
    return %c0_i32, %c0_i32_0 : i32, i32
  }
  func.func @transform_1(%arg0: i32) -> (i32, i32) {
    %c0_i32 = arith.constant 0 : i32
    %c0_i32_0 = arith.constant 0 : i32
    return %c0_i32, %arg0 : i32, i32
  }
  func.func @transform_2(%arg0: i32) -> (i32, i32) {
    %c0_i32 = arith.constant 0 : i32
    %c0_i32_0 = arith.constant 0 : i32
    return %c0_i32, %arg0 : i32, i32
  }
  func.func @transform_3(%arg0: i32) -> (i32, i32) {
    %c0_i32 = arith.constant 0 : i32
    %c0_i32_0 = arith.constant 0 : i32
    return %arg0, %c0_i32 : i32, i32
  }
}

</mosaic_0001>

<bundles_post_ra>
// kernel: tpu_custom_call.1
= control target key start
LH: loop header
LB: loop body
LE: loop exit
PB: predicated region body
PF: predicated region fallthrough
CT: control target
= control target key end

     0   :  { %v123_v1 = vmov 0   ;;  %v124_v2 = vmov 1   ;;  %s173_s0 = inlined_call_operand.vmem [shape: f32[9,2], index: 0, kind: input, shape index: {}]   ;;  %s174_s1 = inlined_call_operand.vmem [shape: f32[9,8], index: 1, kind: input, shape index: {}]   ;;  %s175_s2 = inlined_call_operand.vmem [shape: f32[1,8], index: 2, kind: input, shape index: {}]   ;;  %s176_s3 = inlined_call_operand.hbm [shape: f32[8,128], index: 3, kind: output, shape index: {}]  }
   0x1   :  { %v18_v0 = vld [vmem:[%s173_s0] sm:$0xff]  ;;  %97 = vset.pattern.permute.xlu1 %v123_v1  ;;  %96 = vset.pattern.permute.xlu0 %v124_v2 }
   0x2   :  { %8 = vsyncpa [#allocation3], 0  ;;  %41 = vperm.xlu1 %97, %v18_v0   ;;  %30 = vperm.xlu0 %96, %v18_v0   ;;  %v19_v3 = vld [vmem:[%s173_s0 + $0x8] sm:$0x1]  ;;  %v15_v4 = vld [vmem:[%s174_s1] sm:$0xff]  ;;  %vm52_vm0 = vcmask 64512   ;;  %v66_v29 = vlaneseq }
   0x3   :  { %v90_v5 = vld [vmem:[%s175_s2] ss:$0 sm:$0xff]  ;;  %v16_v7 = vld [vmem:[%s174_s1 + $0x8] sm:$0x1]  ;;  %vm54_vm1 = vcmask 57344   ;;  %s125_s0 = smov [#allocation2]  }
   0x4   :  { %v26_v6 = vsub.f32 %v90_v5, %v15_v4  ;;  %v27_v12 = vsub.f32 %v90_v5, %v16_v7  ;;  %v67_v30 = vshrl.u32 %v66_v29, 7  ;;  %v69_v31 = vand.u32 127, %v66_v29  ;;  %s82_s1 = sshll.u32 %s125_s0, 4  ;;  %s83_s1 = int_to_ptr.vmem [resolvable:$true] %s82_s1 }
   0x5   :  { %s99_s22 = scalar_lea.vmem %s83_s1, 128  ;;  %p104_p1 = scmp.lt.s32.totalorder %s83_s1, %s83_s1 }
   0x6   :  { %45 = vperm.xlu1 %97, %v19_v3   ;;  %35 = vperm.xlu0 %96, %v19_v3   ;;  %vm70_vm2 = vcmp.eq.s32.totalorder %v67_v30, 0  ;;  %vm71_vm3 = vcmp.eq.s32.totalorder %v69_v31, 0  ;;  %p100_p0 = scmp.ne.s32.totalorder %s83_s1, %s99_s22  ;;  %p105_p2 = scmp.lt.s32.totalorder %s99_s22, %s99_s22 }
   0x7   :  { %vm72_vm4 = vmand %vm70_vm2, %vm71_vm3 }
   0x8   :  { %p106_p3 = por %p105_p2, %p104_p1 }
   0xa   :  { %98 = vset.pattern.permute.xlu0 %v123_v1  ;;  %p107_p4 = pnand %p106_p3, %p100_p0 }
  0x81   :  { %v42_v8 = vpop.permute.xlu1 %41  ;;  %v31_v9 = vpop.permute.xlu0 %30 }
  0x82   :  { %v48_v10 = vmul.f32 %v42_v8, %v26_v6  ;;  %v38_v11 = vmul.f32 %v31_v9, %v26_v6 }
  0x84   :  { %v50_v15 = vmax.f32 %v38_v11, %v48_v10 }
  0x85   :  { %v46_v13 = vpop.permute.xlu1 %45  ;;  %v36_v14 = vpop.permute.xlu0 %35 }
  0x86   :  { %v49_v16 = vmul.f32 %v46_v13, %v27_v12  ;;  %v39_v17 = vmul.f32 %v36_v14, %v27_v12  ;;  %v53_v19 = vsel %vm52_vm0, %v50_v15, 0.0 }
  0x88   :  { %v51_v18 = vmax.f32 %v39_v17, %v49_v16 }
  0x8a   :  { %v55_v20 = vsel %vm54_vm1, %v51_v18, 0.0 }
  0x8b   :  { %v56_v21 = vadd.f32 %v55_v20, %v53_v19 }
  0x8d   :  { %57 = vadd.xlane.f32.xlu0 %v56_v21 }
 0x11a   :  { %v58_v22 = vpop.xlane.xlu0 %57 }
 0x11b   :  { %v59_v23 = vrot.slane %v58_v22, 4 }
 0x11d   :  { %v60_v24 = vadd.f32 %v59_v23, %v58_v22 }
 0x11f   :  { %v61_v25 = vrot.slane %v60_v24, 2 }
 0x121   :  { %v62_v26 = vadd.f32 %v61_v25, %v60_v24 }
 0x123   :  { %v63_v27 = vrot.slane %v62_v26, 1 }
 0x125   :  { %v64_v28 = vadd.f32 %v63_v27, %v62_v26 }
 0x127   :  { %91 = vpush %v64_v28 }
 0x158   :  { %s92_s2 = spop %91 }
 0x159   :  { %v73_v32 = vstv %s92_s2 }
 0x15a   :  { %v74_v33 = vsel %vm72_vm4, %v73_v32, 0.0 }
 0x15b   :  { %75 = vst [vmem:[#allocation2] sm:$0xff] %v74_v33 }
 0x15c   :  { %110 = shalt.err (!%p107_p4)
}
 0x15d   :  { %s111_s25 = scalar_lea.hbm %s176_s3, 128 }
 0x15e   :  { %p112_p5 = scmp.ne.s32.totalorder %s176_s3, %s111_s25  ;;  %p115_p6 = scmp.lt.u32.totalorder %s111_s25, %s176_s3 }
 0x160   :  { %p117_p7 = pnand %p115_p6, %p112_p5 }
 0x162   :  { %120 = shalt.err (!%p117_p7)
}
 0x163   :  { %85 = dma.vmem_to_hbm [thread:$0]  %s83_s1, 128, %s176_s3, [#allocation3]  }
 0x164   :  { %121 = dma.done.wait [#allocation3], 128  }
 0x165   :  { %122 = vsyncadd [#allocation3], 4294967168 }
 0x166   :  { %89 = vsyncpa [#allocation3], 1 }

</bundles_post_ra>
